<compile_context>
chip_gen: v7x
topology: tpu7x:2x2x1
jax: 0.10.0
libtpu: 0.0.40
codegen_flags: <defaults>
</compile_context>

<pallas_src>
import jax
import jax.numpy as jnp
import numpy as np
from jax.experimental import pallas as pl
from jax.experimental.pallas import tpu as pltpu

# ---------------- model hyperparameters (mirrors modelGIN.py) ----------------
ATOMIC_NUMBER_TO_INDEX = {1: 0, 6: 1, 7: 2, 8: 3, 9: 4}
NUM_NODE_FEATURES = 8          # pos (3) + embedding (num_node_features - 3 = 5)
HIDDEN_DIM = 64
OUTPUT_DIM = 4
GIN_EPS = 0.0                  # GINConv default (train_eps=False)

FP = 128                       # lane-padded input feature dim (8  -> 128)
HP = 128                       # lane-padded hidden dim        (64 -> 128)
OP = 128                       # lane-padded output dim        (4  -> 128)


# ------------------------------ Pallas kernels --------------------------------
def ginnet_block_kernel(x_ref, adj_ref, pool_ref, w1_ref, b1_ref, w2_ref, b2_ref,
                        pooled_ref):
    """One grid step = one block of GPB graphs packed into TN node rows.

    All matmul operands are bf16 (MXU-native) with f32 accumulation; bias-add /
    ReLU run in f32 on the VPU.  adj already contains the folded (1+eps)*I term.
    """
    # Reassociated GIN aggregation: adjP @ (x @ W1)  ==  (adjP @ x) @ W1.
    xw1 = jnp.dot(x_ref[0], w1_ref[...],
                  preferred_element_type=jnp.float32)                        # [TN, HP] f32

    # nn1 = Linear -> ReLU -> Linear, then the post-conv ReLU (padded lanes stay 0).
    h1 = jnp.maximum(
        jnp.dot(adj_ref[0], xw1.astype(jnp.bfloat16),
                preferred_element_type=jnp.float32) + b1_ref[...], 0.0)      # [TN, HP]
    h2 = jnp.maximum(
        jnp.dot(h1.astype(jnp.bfloat16), w2_ref[...],
                preferred_element_type=jnp.float32) + b2_ref[...], 0.0)      # [TN, HP]

    # global_add_pool: one-hot pool rows exclude padded node slots.
    pooled_ref[0] = jnp.dot(pool_ref[0], h2.astype(jnp.bfloat16),
                            preferred_element_type=jnp.float32)              # [GPB, HP]


def fc_kernel(p_ref, wfc_ref, bfc_ref, out_ref):
    """Single consolidated fc1 over all pooled graph vectors."""
    out_ref[...] = (jnp.dot(p_ref[...].astype(jnp.bfloat16), wfc_ref[...],
                            preferred_element_type=jnp.float32) + bfc_ref[...])


# ------------------------------- wrappers --------------------------------------
def ginnet_forward(x_pk, adj_pk, pool_pk, w1p, b1p, w2p, b2p, wfcp, bfcp):
    """GINNet forward over packed graph blocks; returns lane-padded [G, OP] logits."""
    nb, tn, fp = x_pk.shape
    gpb = pool_pk.shape[1]
    hp = w1p.shape[1]
    op = wfcp.shape[1]

    flops = 2 * nb * (tn * fp * hp + tn * tn * hp + tn * hp * hp + gpb * tn * hp)
    bytes_accessed = (x_pk.size * 2 + adj_pk.size * 2 + pool_pk.size * 2
                      + w1p.size * 2 + w2p.size * 2 + b1p.size * 4 + b2p.size * 4
                      + nb * gpb * hp * 4)

    grid_spec = pl.GridSpec(
        grid=(nb,),
        in_specs=[
            pl.BlockSpec((1, tn, fp), lambda i: (i, 0, 0)),    # x block   (bf16)
            pl.BlockSpec((1, tn, tn), lambda i: (i, 0, 0)),    # adj block (bf16)
            pl.BlockSpec((1, gpb, tn), lambda i: (i, 0, 0)),   # pool block (bf16)
            pl.BlockSpec((fp, hp), lambda i: (0, 0)),          # W1 (bf16, padded)
            pl.BlockSpec((1, hp), lambda i: (0, 0)),           # b1 (f32)
            pl.BlockSpec((hp, hp), lambda i: (0, 0)),          # W2 (bf16)
            pl.BlockSpec((1, hp), lambda i: (0, 0)),           # b2 (f32)
        ],
        out_specs=pl.BlockSpec((1, gpb, hp), lambda i: (i, 0, 0)),
    )
    pooled = pl.pallas_call(
        ginnet_block_kernel,
        out_shape=jax.ShapeDtypeStruct((nb, gpb, hp), jnp.float32),
        grid_spec=grid_spec,
        compiler_params=pltpu.CompilerParams(
            dimension_semantics=("parallel",),     # shard blocks across v7x's 2 TCs
        ),
        cost_estimate=pl.CostEstimate(flops=int(flops), transcendentals=0,
                                      bytes_accessed=int(bytes_accessed)),
    )(x_pk, adj_pk, pool_pk, w1p, b1p, w2p, b2p)

    # Consolidated fc1: one [NB*GPB, HP] @ [HP, OP] matmul for all graphs at once.
    pooled_flat = pooled.reshape(nb * gpb, hp)
    out = pl.pallas_call(
        fc_kernel,
        out_shape=jax.ShapeDtypeStruct((nb * gpb, op), jnp.float32),
    )(pooled_flat, wfcp, bfcp)
    return out


def pad2(a, rows, cols):
    """Zero-pad a 2-D array to [rows, cols] (lane-dense weight padding)."""
    out = jnp.zeros((rows, cols), a.dtype)
    return out.at[:a.shape[0], :a.shape[1]].set(a)


def pack_graphs(graphs, max_n, gpb, feat_dim, feat_pad, eps=GIN_EPS):
    """Pack graphs into fixed-size blocks (host-side glue, numpy).

    graphs: list of (x_g [n, F], edge_index [2, E], n)
    Returns:
      x_pk    [NB, TN, FP]   bf16  node features (zero-padded slots / lanes)
      adj_pk  [NB, TN, TN]   bf16  block-diagonal (A + (1+eps)*I) per graph
      pool_pk [NB, GPB, TN]  bf16  one-hot pooling rows (padded slots excluded)
    """
    num_graphs = len(graphs)
    nb = -(-num_graphs // gpb)
    tn = gpb * max_n
    x_pk = np.zeros((nb, tn, feat_pad), np.float32)
    adj_pk = np.zeros((nb, tn, tn), np.float32)
    pool_pk = np.zeros((nb, gpb, tn), np.float32)
    for gi, (x_g, eidx, n) in enumerate(graphs):
        b, s = divmod(gi, gpb)
        off = s * max_n
        src = np.asarray(eidx[0])
        dst = np.asarray(eidx[1])
        adj = np.zeros((n, n), np.float32)
        np.add.at(adj, (dst, src), 1.0)                       # A[dst, src] += 1
        adj += (1.0 + eps) * np.eye(n, dtype=np.float32)      # fold (1+eps)*I
        x_pk[b, off:off + n, :feat_dim] = np.asarray(x_g)
        adj_pk[b, off:off + n, off:off + n] = adj
        pool_pk[b, s, off:off + n] = 1.0
    return (jnp.asarray(x_pk).astype(jnp.bfloat16),
            jnp.asarray(adj_pk).astype(jnp.bfloat16),
            jnp.asarray(pool_pk).astype(jnp.bfloat16))


if __name__ == "__main__":
    key = jax.random.PRNGKey(0)
    kp, kg = jax.random.split(key)
    ks = jax.random.split(kp, 7)

    F_in, H, O = NUM_NODE_FEATURES, HIDDEN_DIM, OUTPUT_DIM
    emb_dim = F_in - 3
    num_types = len(ATOMIC_NUMBER_TO_INDEX)

    # ---------------- deterministic parameters (shapes per __init__) ----------
    embedding = 0.1 * jax.random.normal(ks[0], (num_types, emb_dim), jnp.float32)
    w1 = 0.1 * jax.random.normal(ks[1], (F_in, H), jnp.float32)
    b1 = 0.1 * jax.random.normal(ks[2], (H,), jnp.float32)
    w2 = 0.1 * jax.random.normal(ks[3], (H, H), jnp.float32)
    b2 = 0.1 * jax.random.normal(ks[4], (H,), jnp.float32)
    wfc = 0.1 * jax.random.normal(ks[5], (H, O), jnp.float32)
    bfc = 0.1 * jax.random.normal(ks[6], (O,), jnp.float32)

    # lane-dense padded parameters: matmul weights in bf16, biases stay f32.
    w1p = pad2(w1, FP, HP).astype(jnp.bfloat16)
    b1p = pad2(b1[None, :], 1, HP)
    w2p = pad2(w2, HP, HP).astype(jnp.bfloat16)
    b2p = pad2(b2[None, :], 1, HP)
    wfcp = pad2(wfc, HP, OP).astype(jnp.bfloat16)
    bfcp = pad2(bfc[None, :], 1, OP)

    # ---------------- small synthetic batch of molecular graphs ---------------
    NUM_GRAPHS = 64
    MAX_N = 8                  # node slots per graph (padded)
    GPB = 16                   # graphs per block  ->  TN = 128 node rows per block
    gkeys = jax.random.split(kg, NUM_GRAPHS)
    graphs = []
    for g in range(NUM_GRAPHS):
        n = 4 + (g % (MAX_N - 3))                      # 4..8 atoms
        k_pos, k_z = jax.random.split(gkeys[g])
        pos = jax.random.normal(k_pos, (n, 3), jnp.float32)
        z_idx = jax.random.randint(k_z, (n,), 0, num_types)
        # bidirectional chain edges (src -> dst), like a small molecule backbone
        src = jnp.concatenate([jnp.arange(n - 1), jnp.arange(1, n)])
        dst = jnp.concatenate([jnp.arange(1, n), jnp.arange(n - 1)])
        edge_index = jnp.stack([src, dst]).astype(jnp.int32)
        # x = cat([pos, embedding(z_indices)], dim=-1)  -> [n, 8]
        x_g = jnp.concatenate([pos, embedding[z_idx]], axis=-1).astype(jnp.float32)
        graphs.append((x_g, edge_index, n))

    x_pk, adj_pk, pool_pk = pack_graphs(graphs, MAX_N, GPB, F_in, FP)
    NB = x_pk.shape[0]

    out = ginnet_forward(x_pk, adj_pk, pool_pk, w1p, b1p, w2p, b2p, wfcp, bfcp)
    out = jax.block_until_ready(out)

    # slice the lane-padded / slot-padded output back to [num_graphs, O]
    out_graphs = out[:NUM_GRAPHS, :O]

    # ----------------- reference (plain JAX, mirrors the bf16 MXU casts) ------
    def bf(a):
        return a.astype(jnp.bfloat16)

    refs = []
    for (x_g, eidx, n) in graphs:
        adj = jnp.zeros((n, n), jnp.float32).at[eidx[1], eidx[0]].add(1.0)
        adjp = bf(adj + (1.0 + GIN_EPS) * jnp.eye(n, dtype=jnp.float32))
        xw1 = jnp.dot(bf(x_g), bf(w1), preferred_element_type=jnp.float32)
        h1 = jnp.maximum(
            jnp.dot(adjp, bf(xw1), preferred_element_type=jnp.float32) + b1, 0.0)
        h2 = jnp.maximum(
            jnp.dot(bf(h1), bf(w2), preferred_element_type=jnp.float32) + b2, 0.0)
        pooled = jnp.sum(bf(h2).astype(jnp.float32), axis=0)
        refs.append(jnp.dot(bf(pooled), bf(wfc), preferred_element_type=jnp.float32) + bfc)
    ref = jnp.stack(refs)

    assert out_graphs.shape == (NUM_GRAPHS, O)
    assert jnp.allclose(out_graphs, ref, atol=5e-3, rtol=5e-3), \
        float(jnp.max(jnp.abs(out_graphs - ref)))

    print("KERNEL_OK")
</pallas_src>

<mosaic_0001>
module attributes {stable_mosaic.version = 11 : i64} {
  func.func @ginnet_block_kernel(%arg0: i32, %arg1: memref<1x128x128xbf16, #tpu.memory_space<vmem>>, %arg2: memref<1x128x128xbf16, #tpu.memory_space<vmem>>, %arg3: memref<1x16x128xbf16, #tpu.memory_space<vmem>>, %arg4: memref<128x128xbf16, #tpu.memory_space<vmem>>, %arg5: memref<1x128xf32, #tpu.memory_space<vmem>>, %arg6: memref<128x128xbf16, #tpu.memory_space<vmem>>, %arg7: memref<1x128xf32, #tpu.memory_space<vmem>>, %arg8: memref<1x16x128xf32, #tpu.memory_space<vmem>>) attributes {dimension_semantics = [#tpu.dimension_semantics<parallel>], iteration_bounds = array<i64: 4>, scalar_prefetch = 0 : i64, scratch_operands = 0 : i64, tpu.core_type = #tpu.core_type<tc>, window_params = [{transform_indices = @transform_0, window_bounds = array<i64: 1, 128, 128>}, {transform_indices = @transform_1, window_bounds = array<i64: 1, 128, 128>}, {transform_indices = @transform_2, window_bounds = array<i64: 1, 16, 128>}, {pipeline_mode = #tpu.pipeline_mode<synchronous>, transform_indices = @transform_3, window_bounds = array<i64: 128, 128>}, {pipeline_mode = #tpu.pipeline_mode<synchronous>, transform_indices = @transform_4, window_bounds = array<i64: 1, 128>}, {pipeline_mode = #tpu.pipeline_mode<synchronous>, transform_indices = @transform_5, window_bounds = array<i64: 128, 128>}, {pipeline_mode = #tpu.pipeline_mode<synchronous>, transform_indices = @transform_6, window_bounds = array<i64: 1, 128>}, {transform_indices = @transform_7, window_bounds = array<i64: 1, 16, 128>}]} {
    %c0 = arith.constant 0 : index
    %c0_0 = arith.constant 0 : index
    %c0_1 = arith.constant 0 : index
    %0 = vector.load %arg1[%c0, %c0_0, %c0_1] : memref<1x128x128xbf16, #tpu.memory_space<vmem>>, vector<1x128x128xbf16>
    %1 = vector.shape_cast %0 : vector<1x128x128xbf16> to vector<128x128xbf16>
    %c0_2 = arith.constant 0 : index
    %c0_3 = arith.constant 0 : index
    %2 = vector.load %arg4[%c0_2, %c0_3] : memref<128x128xbf16, #tpu.memory_space<vmem>>, vector<128x128xbf16>
    %cst = arith.constant dense<0.000000e+00> : vector<128x128xf32>
    %3 = tpu.matmul %1, %2, %cst {dimension_numbers = #tpu.dot_dimension_numbers<[1], [0], [0], [1], [0, 0, 1, 1], [], []>} : vector<128x128xbf16>, vector<128x128xbf16>, vector<128x128xf32> -> vector<128x128xf32>
    %c0_4 = arith.constant 0 : index
    %c0_5 = arith.constant 0 : index
    %c0_6 = arith.constant 0 : index
    %4 = vector.load %arg2[%c0_4, %c0_5, %c0_6] : memref<1x128x128xbf16, #tpu.memory_space<vmem>>, vector<1x128x128xbf16>
    %5 = vector.shape_cast %4 : vector<1x128x128xbf16> to vector<128x128xbf16>
    %6 = arith.truncf %3 : vector<128x128xf32> to vector<128x128xbf16>
    %cst_7 = arith.constant dense<0.000000e+00> : vector<128x128xf32>
    %7 = tpu.matmul %5, %6, %cst_7 {dimension_numbers = #tpu.dot_dimension_numbers<[1], [0], [0], [1], [0, 0, 1, 1], [], []>} : vector<128x128xbf16>, vector<128x128xbf16>, vector<128x128xf32> -> vector<128x128xf32>
    %c0_8 = arith.constant 0 : index
    %c0_9 = arith.constant 0 : index
    %8 = vector.load %arg5[%c0_8, %c0_9] : memref<1x128xf32, #tpu.memory_space<vmem>>, vector<1x128xf32>
    %9 = vector.broadcast %8 : vector<1x128xf32> to vector<128x128xf32>
    %10 = arith.addf %7, %9 : vector<128x128xf32>
    %cst_10 = arith.constant 0.000000e+00 : f32
    %11 = vector.broadcast %cst_10 : f32 to vector<128x128xf32>
    %12 = arith.maximumf %10, %11 : vector<128x128xf32>
    %13 = arith.truncf %12 : vector<128x128xf32> to vector<128x128xbf16>
    %c0_11 = arith.constant 0 : index
    %c0_12 = arith.constant 0 : index
    %14 = vector.load %arg6[%c0_11, %c0_12] : memref<128x128xbf16, #tpu.memory_space<vmem>>, vector<128x128xbf16>
    %cst_13 = arith.constant dense<0.000000e+00> : vector<128x128xf32>
    %15 = tpu.matmul %13, %14, %cst_13 {dimension_numbers = #tpu.dot_dimension_numbers<[1], [0], [0], [1], [0, 0, 1, 1], [], []>} : vector<128x128xbf16>, vector<128x128xbf16>, vector<128x128xf32> -> vector<128x128xf32>
    %c0_14 = arith.constant 0 : index
    %c0_15 = arith.constant 0 : index
    %16 = vector.load %arg7[%c0_14, %c0_15] : memref<1x128xf32, #tpu.memory_space<vmem>>, vector<1x128xf32>
    %17 = vector.broadcast %16 : vector<1x128xf32> to vector<128x128xf32>
    %18 = arith.addf %15, %17 : vector<128x128xf32>
    %cst_16 = arith.constant 0.000000e+00 : f32
    %19 = vector.broadcast %cst_16 : f32 to vector<128x128xf32>
    %20 = arith.maximumf %18, %19 : vector<128x128xf32>
    %c0_17 = arith.constant 0 : index
    %c0_18 = arith.constant 0 : index
    %c0_19 = arith.constant 0 : index
    %21 = vector.load %arg3[%c0_17, %c0_18, %c0_19] : memref<1x16x128xbf16, #tpu.memory_space<vmem>>, vector<1x16x128xbf16>
    %22 = vector.shape_cast %21 : vector<1x16x128xbf16> to vector<16x128xbf16>
    %23 = arith.truncf %20 : vector<128x128xf32> to vector<128x128xbf16>
    %cst_20 = arith.constant dense<0.000000e+00> : vector<16x128xf32>
    %24 = tpu.matmul %22, %23, %cst_20 {dimension_numbers = #tpu.dot_dimension_numbers<[1], [0], [0], [1], [0, 0, 1, 1], [], []>} : vector<16x128xbf16>, vector<128x128xbf16>, vector<16x128xf32> -> vector<16x128xf32>
    %c0_21 = arith.constant 0 : index
    %c0_22 = arith.constant 0 : index
    %c0_23 = arith.constant 0 : index
    %25 = vector.load %arg8[%c0_21, %c0_22, %c0_23] : memref<1x16x128xf32, #tpu.memory_space<vmem>>, vector<1x16x128xf32>
    %26 = vector.shape_cast %25 : vector<1x16x128xf32> to vector<16x128xf32>
    %27 = vector.shape_cast %24 : vector<16x128xf32> to vector<1x16x128xf32>
    tpu.vector_store %arg8[%c0_21, %c0_22, %c0_23], %27 {strides = array<i32>} : memref<1x16x128xf32, #tpu.memory_space<vmem>>, vector<1x16x128xf32>,
    return
  }
  func.func @transform_0(%arg0: i32) -> (i32, i32, i32) {
    %c0_i32 = arith.constant 0 : i32
    %c0_i32_0 = arith.constant 0 : i32
    %c0_i32_1 = arith.constant 0 : i32
    return %arg0, %c0_i32, %c0_i32_0 : i32, i32, i32
  }
  func.func @transform_1(%arg0: i32) -> (i32, i32, i32) {
    %c0_i32 = arith.constant 0 : i32
    %c0_i32_0 = arith.constant 0 : i32
    %c0_i32_1 = arith.constant 0 : i32
    return %arg0, %c0_i32, %c0_i32_0 : i32, i32, i32
  }
  func.func @transform_2(%arg0: i32) -> (i32, i32, i32) {
    %c0_i32 = arith.constant 0 : i32
    %c0_i32_0 = arith.constant 0 : i32
    %c0_i32_1 = arith.constant 0 : i32
    return %arg0, %c0_i32, %c0_i32_0 : i32, i32, i32
  }
  func.func @transform_3(%arg0: i32) -> (i32, i32) {
    %c0_i32 = arith.constant 0 : i32
    %c0_i32_0 = arith.constant 0 : i32
    %c0_i32_1 = arith.constant 0 : i32
    return %c0_i32, %c0_i32_0 : i32, i32
  }
  func.func @transform_4(%arg0: i32) -> (i32, i32) {
    %c0_i32 = arith.constant 0 : i32
    %c0_i32_0 = arith.constant 0 : i32
    %c0_i32_1 = arith.constant 0 : i32
    return %c0_i32, %c0_i32_0 : i32, i32
  }
  func.func @transform_5(%arg0: i32) -> (i32, i32) {
    %c0_i32 = arith.constant 0 : i32
    %c0_i32_0 = arith.constant 0 : i32
    %c0_i32_1 = arith.constant 0 : i32
    return %c0_i32, %c0_i32_0 : i32, i32
  }
  func.func @transform_6(%arg0: i32) -> (i32, i32) {
    %c0_i32 = arith.constant 0 : i32
    %c0_i32_0 = arith.constant 0 : i32
    %c0_i32_1 = arith.constant 0 : i32
    return %c0_i32, %c0_i32_0 : i32, i32
  }
  func.func @transform_7(%arg0: i32) -> (i32, i32, i32) {
    %c0_i32 = arith.constant 0 : i32
    %c0_i32_0 = arith.constant 0 : i32
    %c0_i32_1 = arith.constant 0 : i32
    return %arg0, %c0_i32, %c0_i32_0 : i32, i32, i32
  }
}

</mosaic_0001>

<bundles_post_ra>
// kernel: tpu_custom_call.1
= control target key start
LH: loop header
LB: loop body
LE: loop exit
PB: predicated region body
PF: predicated region fallthrough
CT: control target
= control target key end

     0   :  { %s2211_s0 = inlined_call_operand.hbm [shape: bf16[4,128,128], index: 0, kind: input, shape index: {}]   ;;  %s2212_s1 = inlined_call_operand.hbm [shape: bf16[4,128,128], index: 1, kind: input, shape index: {}]   ;;  %s2213_s2 = inlined_call_operand.hbm [shape: bf16[4,16,128], index: 2, kind: input, shape index: {}]   ;;  %s2214_s3 = inlined_call_operand.hbm [shape: bf16[128,128], index: 3, kind: input, shape index: {}]   ;;  %s2215_s4 = inlined_call_operand.vmem [shape: f32[1,128], index: 4, kind: input, shape index: {}]   ;;  %s2216_s5 = inlined_call_operand.hbm [shape: bf16[128,128], index: 5, kind: input, shape index: {}]   ;;  %s2217_s6 = inlined_call_operand.vmem [shape: f32[1,128], index: 6, kind: input, shape index: {}]   ;;  %s2218_s7 = inlined_call_operand.hbm [shape: f32[4,16,128], index: 7, kind: output, shape index: {}]  }
   0x1   :  { %2237 = sst [smem:[#allocation20_spill]] %s2212_s1 }
   0x2   :  { %2238 = sst [smem:[#allocation21_spill]] %s2214_s3 }
   0x3   :  { %12 = vsyncpa [#allocation3], 0 }
   0x4   :  { %14 = vsyncpa [#allocation3 + $0x1], 0 }
   0x5   :  { %15 = vsyncpa [#allocation6], 0 }
   0x6   :  { %17 = vsyncpa [#allocation6 + $0x1], 0 }
   0x7   :  { %18 = vsyncpa [#allocation9], 0 }
   0x8   :  { %19 = vsyncpa [#allocation4], 0 }
   0x9   :  { %21 = vsyncpa [#allocation4 + $0x1], 0  ;;  %s1849_s24 = smov 0   ;;  %s1851_s25 = smov 0  }
   0xa   :  { %s1853_s26 = smov 0   ;;  %s1855_s27 = smov 0  }
   0xb LB: > { %2239 = sst [smem:[#allocation16_spill]] %s1791_s26  ;;  %s1870_s28 = sadd.s32 4294967295, %s1795_s27   ;;  %s1795_s27 = sphi %s1855_s27, %s2271_s27   ;;  %s1791_s26 = sphi %s1853_s26, %s2273_s26   ;;  %s1787_s25 = sphi %s1851_s25, %s2275_s25   ;;  %s1783_s24 = sphi %s1849_s24, %s2274_s24  }
   0xc   : > { %s1221_s29 = sadd.s32 4294967294, %s1795_s27   ;;  %s1874_s30 = sadd.s32 1, %s1795_s27  }
   0xd   : > { %2240 = sst [smem:[#allocation17_spill]] %s1874_s30  ;;  %s34_s8 = sadd.s32 1, %s1791_s26 }
   0xe   : > { %s31_s9 = ssub.s32 %s1795_s27, %s1874_s30  ;;  %p41_p0 = scmp.ne.s32.totalorder %s1791_s26, %s1787_s25 }
   0xf   : > { %p32_p1 = scmp.eq.s32.totalorder %s31_s9, 0  ;;  %p42_p2 = scmp.eq.s32.totalorder %s1795_s27, 0 }
  0x10   : > { %p47_p3 = scmp.ne.s32.totalorder %s1787_s25, %s1783_s24  ;;  %p2219_p4 = scmp.eq.s32.totalorder %s1870_s28, 0 }
  0x11   : > { %s1886_s10 = scalar_select %p32_p1, %s1791_s26, %s34_s8  }
  0x12   : > { %p1888_p5 = por %p42_p2, %p41_p0  ;;  %p1894_p6 = por %p2219_p4, %p47_p3 }
  0x13   : > { %2241 = sst [smem:[#allocation18_spill]] %s1886_s10  ;;  %p207_p7 = scmp.eq.s32.totalorder %s1870_s28, 3 }
  0x14   : > { %s2242_s11 = scalar_select %p1888_p5, 1, 0 }
  0x15   : > { %s2243_s12 = scalar_select %p1894_p6, 1, 0 }
  0x16   : > { %p213_p8 = scmp.eq.s32.totalorder %s1221_s29, 3  ;;  %p1222_p9 = scmp.ge.s32.totalorder %s1795_s27, 1 }
  0x17   : > { %p220_p10 = scmp.lt.s32.totalorder %s1795_s27, 5  ;;  %p1901_p11 = por %p207_p7, %p41_p0 }
  0x18   : > { %p1905_p12 = por %p213_p8, %p47_p3  ;;  %s1797_s16 = smov [#allocation8]  }
  0x19   : > { %s2244_s13 = scalar_select %p1901_p11, 1, 0 }
  0x1a   : > { %s2245_s14 = scalar_select %p1905_p12, 1, 0 }
  0x1b   : > { %p1909_p13 = pnand %p1222_p9, %p220_p10  ;;  %s232_s17 = sshll.u32 %s1797_s16, 4  ;;  %s233_s17 = int_to_ptr.vmem [resolvable:$true] %s232_s17 }
  0x1c   : > { %2246 = sst [smem:[#allocation19_spill]] %s2245_s14  ;;  %s1923_s19 = sand.u32 1, %s1791_s26  }
  0x1d   : > { %s2247_s15 = scalar_select %p1909_p13, 1, 0 }
  0x1e   : > { %p1475_p1 = pneg %p1909_p13  ;;  %s2249_s3 = sld [smem:[#allocation21_spill]] }
  0x20   : > { %p1917_p2 = pnand %p1475_p1, %p2219_p4 }
  0x22   : > { %s2248_s18 = scalar_select %p1917_p2, 1, 0 }
  0x23   : > { %p2229_p7 = pneg %p1917_p2 }
  0x24   : > { %s1575_s23 = scalar_lea.hbm %s2249_s3, 1024 }
  0x25   : > { %p1576_p3 = scmp.ne.s32.totalorder %s2249_s3, %s1575_s23  ;;  %p1582_p10 = scmp.lt.u32.totalorder %s1575_s23, %s2249_s3 }
  0x27   : > { %p1578_p8 = pnand %p2229_p7, %p1576_p3 }
  0x29   : > { %p1579_p9 = pneg %p1578_p8 }
  0x2b   : > { %p1584_p1 = pnand %p1582_p10, %p1579_p9 }
  0x2d   : > { %1587 = shalt.err (!%p1584_p1)
}
  0x2e   : > { %s1588_s20 = scalar_lea.vmem %s233_s17, 1024  ;;  %p1596_p11 = scmp.lt.s32.totalorder %s233_s17, %s233_s17 }
  0x2f   : > { %p1589_p4 = scmp.ne.s32.totalorder %s233_s17, %s1588_s20  ;;  %p1597_p6 = scmp.lt.s32.totalorder %s1588_s20, %s1588_s20 }
  0x31   : > { %p1591_p0 = pnand %p1589_p4, %p2229_p7  ;;  %p1598_p13 = por %p1597_p6, %p1596_p11 }
  0x33   : > { %p1592_p12 = pneg %p1591_p0 }
  0x35   : > { %p1599_p5 = pnand %p1598_p13, %p1592_p12 }
  0x37   : > { %1602 = shalt.err (!%p1599_p5)
}
  0x38   : > { %s2226_s21 = smov 64   ;;  %s1799_s22 = smov 4  }
  0x39   : > { %1478 = dma.hbm_to_vmem [thread:$0]  (!%p1917_p2), %s2249_s3, 1024, %s233_s17, [#allocation9], %s2226_s21, %s2226_s21, %s1799_s22  }
  0x3a   : > { %s2228_s20 = sshll.u32 %s1795_s27, 10  ;;  %p2250_p4 = scmp.ne.s32.totalorder %s2242_s11, 0 }
  0x3b   : > { %p2251_p5 = scmp.lt.s32.totalorder %s1795_s27, 4  ;;  %s286_s9 = sand.u32 1, %s1795_s27  }
  0x3c   : > { %s2253_s1 = sld [smem:[#allocation20_spill]]  ;;  %s2254_s30 = sshll.u32 %s1923_s19, 6 }
  0x3d   : > { %p1956_p6 = pnand %p2251_p5, %p2250_p4  ;;  %s290_s17 = scalar_lea.vmem [#allocation5], %s2254_s30 }
  0x3e   : > { %s297_s11 = sshll.u32 %s290_s17, 4  ;;  %s1972_s23 = scalar_lea.sflag [#allocation6], %s286_s9  ;;  %s1970_s11 = int_to_ptr.vmem [resolvable:$true] %s297_s11 }
  0x3f   : > { %s2252_s8 = scalar_select %p1956_p6, 1, 0 }
  0x40   : > { %p1978_p12 = pneg %p1956_p6 }
  0x42   : > { %s1966_s26 = scalar_lea.hbm %s2253_s1, %s2228_s20  ;;  %s1608_s30 = scalar_lea.hbm %s2253_s1, 4096 }
  0x43   : > { %s1603_s29 = scalar_lea.hbm %s1966_s26, 1024  ;;  %p1609_p3 = scmp.lt.u32.totalorder %s1966_s26, %s2253_s1 }
  0x44   : > { %p1604_p11 = scmp.ne.s32.totalorder %s1966_s26, %s1603_s29  ;;  %p1610_p8 = scmp.lt.u32.totalorder %s1608_s30, %s1603_s29 }
  0x45   : > { %s2255_s21 = scalar_select %p1978_p12, 1, 0 }
  0x46   : > { %p1606_p13 = pnand %p1978_p12, %p1604_p11  ;;  %p1611_p9 = por %p1610_p8, %p1609_p3 }
  0x47   : > { %p1612_p10 = scmp.lt.u32.totalorder %s1603_s29, %s1966_s26 }
  0x48   : > { %p1607_p0 = pneg %p1606_p13 }
  0x49   : > { %p1613_p1 = por %p1612_p10, %p1611_p9 }
  0x4b   : > { %p1614_p4 = pnand %p1613_p1, %p1607_p0 }
  0x4d   : > { %1617 = shalt.err (!%p1614_p4)
}
  0x4e   : > { %s1618_s9 = scalar_lea.vmem %s1970_s11, 1024  ;;  %s1800_s10 = smov [#allocation5]  }
  0x4f   : > { %p1619_p5 = scmp.ne.s32.totalorder %s1970_s11, %s1618_s9  ;;  %s1623_s16 = sshll.u32 %s1800_s10, 4  ;;  %s1624_s16 = int_to_ptr.vmem [resolvable:$false] %s1623_s16 }
  0x50   : > { %s1625_s20 = scalar_lea.vmem %s1624_s16, 2048  ;;  %p1626_p7 = scmp.lt.s32.totalorder %s1970_s11, %s1624_s16 }
  0x51   : > { %p1621_p11 = pnand %p1619_p5, %p1978_p12  ;;  %p1627_p2 = scmp.lt.s32.totalorder %s1625_s20, %s1618_s9 }
  0x53   : > { %p1622_p13 = pneg %p1621_p11  ;;  %p1628_p3 = por %p1627_p2, %p1626_p7 }
  0x55   : > { %p1629_p8 = pnand %p1628_p3, %p1622_p13 }
  0x57   : > { %1632 = shalt.err (!%p1629_p8)
}
  0x58   : > { %s2256_s29 = smov 64   ;;  %s1801_s30 = smov [#allocation10]  }
  0x59   : > { %1488 = dma.hbm_to_vmem [thread:$0]  (!%p1956_p6), %s1966_s26, 1024, %s1970_s11, %s1972_s23, %s2256_s29, %s2256_s29, %s1799_s22  }
  0x5a   : > { %s248_s17 = sshll.u32 %s1801_s30, 4  ;;  %s1633_s9 = scalar_lea.hbm %s2216_s5, 1024  ;;  %s249_s17 = int_to_ptr.vmem [resolvable:$true] %s248_s17 }
  0x5b   : > { %p1634_p2 = scmp.ne.s32.totalorder %s2216_s5, %s1633_s9  ;;  %p2257_p7 = scmp.ne.s32.totalorder %s2248_s18, 0 }
  0x5c   : > { %p1640_p1 = scmp.lt.u32.totalorder %s1633_s9, %s2216_s5 }
  0x5d   : > { %p2258_p0 = pneg %p2257_p7 }
  0x5f   : > { %p1636_p9 = pnand %p1634_p2, %p2258_p0 }
  0x61   : > { %p1637_p10 = pneg %p1636_p9 }
  0x63   : > { %p1642_p4 = pnand %p1640_p1, %p1637_p10 }
  0x65   : > { %1645 = shalt.err (!%p1642_p4)
}
  0x66   : > { %s1646_s26 = scalar_lea.vmem %s249_s17, 1024  ;;  %p2259_p11 = pmov %p2258_p0 }
  0x67   : > { %p1647_p5 = scmp.ne.s32.totalorder %s249_s17, %s1646_s26  ;;  %p1654_p8 = scmp.lt.s32.totalorder %s249_s17, %s249_s17 }
  0x68   : > { %p1655_p6 = scmp.lt.s32.totalorder %s1646_s26, %s1646_s26 }
  0x69   : > { %p1649_p13 = pnand %p1647_p5, %p2259_p11 }
  0x6a   : > { %p1656_p12 = por %p1655_p6, %p1654_p8 }
  0x6b   : > { %p1650_p3 = pneg %p1649_p13 }
  0x6d   : > { %p1657_p0 = pnand %p1656_p12, %p1650_p3 }
  0x6f   : > { %1660 = shalt.err (!%p1657_p0)
}
  0x70   : > { %1481 = dma.hbm_to_vmem [thread:$0]  (!%p2257_p7), %s2216_s5, 1024, %s249_s17, [#allocation9], %s2256_s29, %s2256_s29, %s1799_s22  }
  0x71   : > { %s2260_s14 = sshll.u32 %s1795_s27, 10  ;;  %s2261_s9 = sshll.u32 %s1923_s19, 6 }
  0x72   : > { %s2033_s10 = scalar_lea.hbm %s2211_s0, %s2260_s14  ;;  %s269_s18 = scalar_lea.vmem [#allocation2], %s2261_s9 }
  0x73   : > { %s276_s16 = sshll.u32 %s269_s18, 4  ;;  %s1232_s20 = sshll.u32 %s1923_s19, 3  ;;  %s2037_s16 = int_to_ptr.vmem [resolvable:$true] %s276_s16 }
  0x74   : > { %s266_s26 = scalar_lea.sflag [#allocation3], %s1923_s19  ;;  %s1661_s1 = scalar_lea.hbm %s2033_s10, 1024 }
  0x75   : > { %p1662_p6 = scmp.ne.s32.totalorder %s2033_s10, %s1661_s1  ;;  %p2262_p12 = scmp.ne.s32.totalorder %s2255_s21, 0 }
  0x76   : > { %s1666_s14 = scalar_lea.hbm %s2211_s0, 4096  ;;  %p1667_p9 = scmp.lt.u32.totalorder %s2033_s10, %s2211_s0 }
  0x77   : > { %p1664_p2 = pnand %p1662_p6, %p2262_p12  ;;  %p1668_p10 = scmp.lt.u32.totalorder %s1666_s14, %s1661_s1 }
  0x78   : > { %p1670_p4 = scmp.lt.u32.totalorder %s1661_s1, %s2033_s10 }
  0x79   : > { %p1665_p7 = pneg %p1664_p2  ;;  %p1669_p1 = por %p1668_p10, %p1667_p9 }
  0x7b   : > { %p1671_p5 = por %p1670_p4, %p1669_p1 }
  0x7d   : > { %p1672_p11 = pnand %p1671_p5, %p1665_p7 }
  0x7f   : > { %1675 = shalt.err (!%p1672_p11)
}
  0x80   : > { %s1676_s9 = scalar_lea.vmem %s2037_s16, 1024  ;;  %s1802_s18 = smov [#allocation2]  }
  0x81   : > { %p1677_p13 = scmp.ne.s32.totalorder %s2037_s16, %s1676_s9  ;;  %s1681_s17 = sshll.u32 %s1802_s18, 4  ;;  %s1682_s17 = int_to_ptr.vmem [resolvable:$false] %s1681_s17 }
  0x82   : > { %s1683_s3 = scalar_lea.vmem %s1682_s17, 2048  ;;  %p1684_p0 = scmp.lt.s32.totalorder %s2037_s16, %s1682_s17 }
  0x83   : > { %p1679_p3 = pnand %p1677_p13, %p2262_p12  ;;  %p1685_p6 = scmp.lt.s32.totalorder %s1683_s3, %s1676_s9 }
  0x85   : > { %p1680_p8 = pneg %p1679_p3  ;;  %p1686_p2 = por %p1685_p6, %p1684_p0 }
  0x87   : > { %p1687_p9 = pnand %p1686_p2, %p1680_p8 }
  0x89   : > { %1690 = shalt.err (!%p1687_p9)
}
  0x8a   : > { %p2263_p7 = scmp.ne.s32.totalorder %s2252_s8, 0  ;;  %s1284_s1 = sshll.u32 %s1795_s27, 7 }
  0x8b   : > { %s2071_s30 = scalar_lea.hbm %s2213_s2, %s1284_s1  ;;  %s311_s9 = scalar_lea.vmem [#allocation7], %s1232_s20 }
  0x8c   : > { %1485 = dma.hbm_to_vmem [thread:$0]  (!%p2263_p7), %s2033_s10, 1024, %s2037_s16, %s266_s26, %s2256_s29, %s2256_s29, %s1799_s22  }
  0x8d   : > { %s318_s18 = sshll.u32 %s311_s9, 4  ;;  %s1691_s17 = scalar_lea.hbm %s2071_s30, 128  ;;  %s2075_s18 = int_to_ptr.vmem [resolvable:$true] %s318_s18 }
  0x8e   : > { %p1692_p10 = scmp.ne.s32.totalorder %s2071_s30, %s1691_s17  ;;  %s1696_s26 = scalar_lea.hbm %s2213_s2, 512 }
  0x8f   : > { %p1697_p5 = scmp.lt.u32.totalorder %s2071_s30, %s2213_s2  ;;  %p1698_p11 = scmp.lt.u32.totalorder %s1696_s26, %s1691_s17 }
  0x90   : > { %p1694_p1 = pnand %p1692_p10, %p2262_p12  ;;  %p1700_p3 = scmp.lt.u32.totalorder %s1691_s17, %s2071_s30 }
  0x91   : > { %p1699_p13 = por %p1698_p11, %p1697_p5 }
  0x92   : > { %p1695_p4 = pneg %p1694_p1 }
  0x93   : > { %p1701_p8 = por %p1700_p3, %p1699_p13 }
  0x95   : > { %p1702_p0 = pnand %p1701_p8, %p1695_p4 }
  0x97   : > { %1705 = shalt.err (!%p1702_p0)
}
  0x98   : > { %s1706_s19 = scalar_lea.vmem %s2075_s18, 128  ;;  %s1803_s20 = smov [#allocation7]  }
  0x99   : > { %p1707_p6 = scmp.ne.s32.totalorder %s2075_s18, %s1706_s19  ;;  %s1711_s14 = sshll.u32 %s1803_s20, 4  ;;  %s1712_s14 = int_to_ptr.vmem [resolvable:$false] %s1711_s14 }
  0x9a   : > { %s1713_s11 = scalar_lea.vmem %s1712_s14, 256  ;;  %p1714_p10 = scmp.lt.s32.totalorder %s2075_s18, %s1712_s14 }
  0x9b   : > { %p1709_p2 = pnand %p1707_p6, %p2262_p12  ;;  %p1715_p1 = scmp.lt.s32.totalorder %s1713_s11, %s1706_s19 }
  0x9d   : > { %p1710_p9 = pneg %p1709_p2  ;;  %p1716_p5 = por %p1715_p1, %p1714_p10 }
  0x9f   : > { %p1717_p11 = pnand %p1716_p5, %p1710_p9 }
  0xa1   : > { %1720 = shalt.err (!%p1717_p11)
}
  0xa2   : > { %1491 = dma.hbm_to_vmem [thread:$0]  (!%p2263_p7), %s2071_s30, 128, %s2075_s18, %s1972_s23, %s2256_s29, %s2256_s29, %s1799_s22  }
  0xa3   : > { %p2264_p12 = scmp.ne.s32.totalorder %s2247_s15, 0 }
  0xa4   : > { %s2105_s21 = sand.u32 (!%p2264_p12), 1, %s1787_s25   ;;  %p2265_p4 = scmp.ne.s32.totalorder (!%p2264_p12), %s2243_s12, 0 }
  0xa5   : > { %330 = sbr.rel (%p2264_p12) target bundleno = 1164 (0x48c), region = 48  ;;  %s1236_s9 = sshll.u32 (!%p2264_p12), %s2105_s21, 6 }
  0xa6   : > { %s333_s17 = scalar_lea.sflag (!%p2264_p12), [#allocation3], %s2105_s21  ;;  %s2109_s10 = scalar_lea.vmem (!%p2264_p12), [#allocation2], %s1236_s9 }
  0xac   : > { %1766 = dma.done.wait (%p2265_p4), %s333_s17, 1024  }
  0xad   : > { %1768 = vsyncadd (%p2265_p4), %s333_s17, 4294966272  ;;  %s341_s22 = sand.u32 1, %s1870_s28   ;;  %s2116_s8 = scalar_lea.vmem [#allocation5], %s1236_s9 }
  0xae   : > { %s342_s15 = scalar_lea.sflag [#allocation6], %s341_s22 }
  0xaf   : > { %1770 = dma.done.wait (%p2265_p4), %s342_s15, 1152  }
  0xb0   : > { %1772 = vsyncadd (%p2265_p4), %s342_s15, 4294966144  ;;  %s1238_s23 = sshll.u32 %s2105_s21, 3  ;;  %p2266_p7 = scmp.eq.s32.totalorder %s1870_s28, 0 }
  0xb1   : > { %s2123_s29 = scalar_lea.vmem [#allocation7], %s1238_s23 }
  0xb2   : > { %1774 = dma.done.wait (%p2266_p7), [#allocation9], 2048   ;;  %p2267_p13 = pmov %p2266_p7 }
  0xb3   : > { %v1542_v0 = vld [vmem:[#allocation8] sm:$0xff]   ;;  %v1543_v1 = vld [vmem:[#allocation8 + $0x8] sm:$0xff]   ;;  %v1544_v2 = vld [vmem:[#allocation8 + $0x10] sm:$0xff]   ;;  %vm1805_vm0 = vmmov 0   ;;  %s1241_s26 = sshll.u32 %s2105_s21, 4  ;;  %s1285_s19 = sshll.u32 %s1870_s28, 8 }
  0xb4   : > { %1776 = vsyncadd (%p2267_p13), [#allocation9], 4294965248  ;;  %1343 = vmatprep.subr.bf16.mxu0 %v1542_v0  ;;  %v1545_v3 = vld [vmem:[#allocation8 + $0x18] sm:$0xff]   ;;  %v1550_v4 = vld [vmem:[%s2109_s10] sm:$0xff]   ;;  %s402_s3 = scalar_lea.vmem [#allocation11], %s1241_s26  ;;  %s2168_s11 = scalar_lea.hbm %s2218_s7, %s1285_s19 }
  0xb5   : > { %1344 = vmatpush3.bf16.msra.mxu0 %v1542_v0  ;;  %1359 = vmatprep.mubr.bf16.mxu0 %v1550_v4  ;;  %v1546_v5 = vld [vmem:[#allocation8 + $0x20] sm:$0xff]   ;;  %v1547_v6 = vld [vmem:[#allocation8 + $0x28] sm:$0xff]   ;;  %v1548_v7 = vld [vmem:[#allocation8 + $0x30] sm:$0xff]   ;;  %s1086_s1 = sshll.u32 %s402_s3, 4  ;;  %s1073_s9 = scalar_lea.sflag [#allocation4], %s2105_s21  ;;  %s2163_s1 = int_to_ptr.vmem [resolvable:$true] %s1086_s1 }
  0xb6   : > { %1345 = vmatprep.subr.bf16.mxu0 %v1543_v1  ;;  %v1549_v8 = vld [vmem:[#allocation8 + $0x38] sm:$0xff]   ;;  %v1552_v10 = vld [vmem:[%s2109_s10 + $0x10] sm:$0xff]   ;;  %v1553_v11 = vld [vmem:[%s2109_s10 + $0x18] sm:$0xff]   ;;  %s1721_s17 = scalar_lea.vmem %s2163_s1, 256  ;;  %p2268_p8 = scmp.ne.s32.totalorder %s2244_s13, 0 }
  0xb7   : > { %v1551_v9 = vld [vmem:[%s2109_s10 + $0x8] sm:$0xff]   ;;  %v1554_v12 = vld [vmem:[%s2109_s10 + $0x20] sm:$0xff]   ;;  %v1556_v14 = vld [vmem:[%s2109_s10 + $0x30] sm:$0xff]   ;;  %p1722_p3 = scmp.ne.s32.totalorder %s2163_s1, %s1721_s17  ;;  %s1806_s28 = smov [#allocation11]  }
  0xb8   : > { %v1555_v13 = vld [vmem:[%s2109_s10 + $0x28] sm:$0xff]   ;;  %v1557_v15 = vld [vmem:[%s2109_s10 + $0x38] sm:$0xff]   ;;  %v1558_v16 = vld [vmem:[%s2116_s8] sm:$0xff]   ;;  %s1725_s10 = sshll.u32 %s1806_s28, 4  ;;  %s1726_s10 = int_to_ptr.vmem [resolvable:$false] %s1725_s10 }
  0xb9   : > { %1346 = vmatpush3.bf16.msra.mxu0 %v1543_v1  ;;  %1391 = vmatprep.mubr.bf16.mxu1 %v1558_v16  ;;  %v1566_v17 = vld [vmem:[#allocation10] sm:$0xff]   ;;  %v1567_v18 = vld [vmem:[#allocation10 + $0x8] sm:$0xff]   ;;  %v1568_v19 = vld [vmem:[#allocation10 + $0x10] sm:$0xff]   ;;  %p1723_p0 = pnand %p1722_p3, %p2268_p8  ;;  %s1727_s22 = scalar_lea.vmem %s1726_s10, 512 }
  0xba   : > { %1347 = vmatprep.subr.bf16.mxu0 %v1544_v2  ;;  %v1569_v20 = vld [vmem:[#allocation10 + $0x18] sm:$0xff]   ;;  %v1570_v21 = vld [vmem:[#allocation10 + $0x20] sm:$0xff]   ;;  %v1571_v22 = vld [vmem:[#allocation10 + $0x28] sm:$0xff]   ;;  %p1728_p2 = scmp.lt.s32.totalorder %s2163_s1, %s1726_s10  ;;  %p1729_p9 = scmp.lt.s32.totalorder %s1727_s22, %s1721_s17 }
  0xbb   : > { %v1559_v47 = vld [vmem:[%s2116_s8 + $0x8] sm:$0xff]   ;;  %v1560_v48 = vld [vmem:[%s2116_s8 + $0x10] sm:$0xff]   ;;  %v1561_v49 = vld [vmem:[%s2116_s8 + $0x18] sm:$0xff]   ;;  %p1724_p6 = pneg %p1723_p0 }
  0xbc   : > { %v1562_v50 = vld [vmem:[%s2116_s8 + $0x20] sm:$0xff]   ;;  %v1563_v51 = vld [vmem:[%s2116_s8 + $0x28] sm:$0xff]   ;;  %v1564_v52 = vld [vmem:[%s2116_s8 + $0x30] sm:$0xff]   ;;  %p1730_p10 = por %p1729_p9, %p1728_p2 }
  0xbd   : > { %1348 = vmatpush3.bf16.msra.mxu0 %v1544_v2  ;;  %v1565_v53 = vld [vmem:[%s2116_s8 + $0x38] sm:$0xff]   ;;  %v1572_v54 = vld [vmem:[#allocation10 + $0x30] sm:$0xff]   ;;  %v1573_v55 = vld [vmem:[#allocation10 + $0x38] sm:$0xff]  }
  0xbe   : > { %1349 = vmatprep.subr.bf16.mxu0 %v1545_v3  ;;  %v1258_v56 = vld [vmem:[%s2215_s4] ss:$0 sm:$0xff]  ;;  %p1731_p1 = pnand %p1730_p10, %p1724_p6 }
  0xc1   : > { %1350 = vmatpush3.bf16.msra.mxu0 %v1545_v3 }
  0xc2   : > { %1351 = vmatprep.subr.bf16.mxu0 %v1546_v5 }
  0xc5   : > { %1352 = vmatpush3.bf16.msra.mxu0 %v1546_v5 }
  0xc6   : > { %1353 = vmatprep.subr.bf16.mxu0 %v1547_v6 }
  0xc9   : > { %1354 = vmatpush3.bf16.msra.mxu0 %v1547_v6 }
  0xca   : > { %1355 = vmatprep.subr.bf16.mxu0 %v1548_v7 }
  0xcd   : > { %1356 = vmatpush3.bf16.msra.mxu0 %v1548_v7 }
  0xce   : > { %1357 = vmatprep.subr.bf16.mxu0 %v1549_v8 }
  0xd1   : > { %1358 = vmatpush3.bf16.msra.mxu0 %v1549_v8 }
  0xd2   : > { %1407 = vmatprep.subr.bf16.mxu0 %v1566_v17 }
  0xd4   : > { %1360 = vmatmul.mubr.bf16.vlgmr.msra.gmra.mrb[0].mxu0 %v1551_v9 }
  0xd5   : > { %1363 = vmatprep.mubr.bf16.mxu0 %v1552_v10  ;;  %1408 = vmatpush3.bf16.msra.mxu0 %v1566_v17 }
  0xd6   : > { %1409 = vmatprep.subr.bf16.mxu0 %v1567_v18 }
  0xd9   : > { %1410 = vmatpush3.bf16.msra.mxu0 %v1567_v18 }
  0xda   : > { %1411 = vmatprep.subr.bf16.mxu0 %v1568_v19 }
  0xdc   : > { %1364 = vmatmul.mubr.bf16.gmra.mrb[4].mxu0 %v1553_v11 }
  0xdd   : > { %1367 = vmatprep.mubr.bf16.mxu0 %v1554_v12  ;;  %1412 = vmatpush3.bf16.msra.mxu0 %v1568_v19 }
  0xde   : > { %1413 = vmatprep.subr.bf16.mxu0 %v1569_v20 }
  0xe1   : > { %1414 = vmatpush3.bf16.msra.mxu0 %v1569_v20 }
  0xe2   : > { %1415 = vmatprep.subr.bf16.mxu0 %v1570_v21 }
  0xe4   : > { %1368 = vmatmul.mubr.bf16.gmra.mrb[8].mxu0 %v1555_v13 }
  0xe5   : > { %1371 = vmatprep.mubr.bf16.mxu0 %v1556_v14  ;;  %1416 = vmatpush3.bf16.msra.mxu0 %v1570_v21 }
  0xe6   : > { %1417 = vmatprep.subr.bf16.mxu0 %v1571_v22 }
  0xe9   : > { %1418 = vmatpush3.bf16.msra.mxu0 %v1571_v22 }
  0xea   : > { %1419 = vmatprep.subr.bf16.mxu0 %v1572_v54 }
  0xec   : > { %1372 = vmatmul.mubr.bf16.gmra.mrb[12].mxu0 %v1557_v15 }
  0xed   : > { %1420 = vmatpush3.bf16.msra.mxu0 %v1572_v54 }
  0xee   : > { %1421 = vmatprep.subr.bf16.mxu0 %v1573_v55 }
  0xf1   : > { %1422 = vmatpush3.bf16.msra.mxu0 %v1573_v55 }
 0x1a7   : > { %v1361_v23 = vpop.f32.mrb[0].mxu0 }
 0x1a8   : > { %v566_v24 = vpop.f32.mrb[1].mxu0 }
 0x1a9   : > { %v1362_v25 = vpop.f32.mrb[2].mxu0 }
 0x1aa   : > { %v646_v26 = vpack.c.bf16 %v1362_v25, %v1361_v23  ;;  %v569_v27 = vpop.f32.mrb[3].mxu0 }
 0x1ab   : > { %v645_v28 = vpack.c.bf16 %v569_v27, %v566_v24 }
 0x1ad   : > { %1375 = vmatprep.subr.bf16.mxu1 %v645_v28 }
 0x1ae   : > { %1376 = vmatpush3.bf16.msra.mxu1 %v645_v28 }
 0x1af   : > { %v1365_v29 = vpop.f32.mrb[4].mxu0  ;;  %1377 = vmatprep.subr.bf16.mxu1 %v646_v26 }
 0x1b0   : > { %v582_v30 = vpop.f32.mrb[5].mxu0 }
 0x1b1   : > { %v1366_v31 = vpop.f32.mrb[6].mxu0 }
 0x1b2   : > { %v648_v32 = vpack.c.bf16 %v1366_v31, %v1365_v29  ;;  %v585_v33 = vpop.f32.mrb[7].mxu0  ;;  %1378 = vmatpush3.bf16.msra.mxu1 %v646_v26 }
 0x1b3   : > { %v647_v34 = vpack.c.bf16 %v585_v33, %v582_v30 }
 0x1b5   : > { %1379 = vmatprep.subr.bf16.mxu1 %v647_v34 }
 0x1b6   : > { %1380 = vmatpush3.bf16.msra.mxu1 %v647_v34 }
 0x1b7   : > { %v1369_v35 = vpop.f32.mrb[8].mxu0  ;;  %1381 = vmatprep.subr.bf16.mxu1 %v648_v32 }
 0x1b8   : > { %v598_v36 = vpop.f32.mrb[9].mxu0 }
 0x1b9   : > { %v1370_v37 = vpop.f32.mrb[10].mxu0 }
 0x1ba   : > { %v650_v38 = vpack.c.bf16 %v1370_v37, %v1369_v35  ;;  %v601_v39 = vpop.f32.mrb[11].mxu0  ;;  %1382 = vmatpush3.bf16.msra.mxu1 %v648_v32 }
 0x1bb   : > { %v649_v40 = vpack.c.bf16 %v601_v39, %v598_v36 }
 0x1bd   : > { %1383 = vmatprep.subr.bf16.mxu1 %v649_v40 }
 0x1be   : > { %1384 = vmatpush3.bf16.msra.mxu1 %v649_v40 }
 0x1bf   : > { %v1373_v41 = vpop.f32.mrb[12].mxu0  ;;  %1385 = vmatprep.subr.bf16.mxu1 %v650_v38 }
 0x1c0   : > { %v614_v42 = vpop.f32.mrb[13].mxu0 }
 0x1c1   : > { %v1374_v43 = vpop.f32.mrb[14].mxu0 }
 0x1c2   : > { %v652_v44 = vpack.c.bf16 %v1374_v43, %v1373_v41  ;;  %v617_v45 = vpop.f32.mrb[15].mxu0  ;;  %1386 = vmatpush3.bf16.msra.mxu1 %v650_v38 }
 0x1c3   : > { %v651_v46 = vpack.c.bf16 %v617_v45, %v614_v42 }
 0x1c5   : > { %1387 = vmatprep.subr.bf16.mxu1 %v651_v46 }
 0x1c6   : > { %1388 = vmatpush3.bf16.msra.mxu1 %v651_v46 }
 0x1c7   : > { %1389 = vmatprep.subr.bf16.mxu1 %v652_v44 }
 0x1ca   : > { %1390 = vmatpush3.bf16.msra.mxu1 %v652_v44 }
 0x1cd   : > { %1392 = vmatmul.mubr.bf16.vlgmr.msra.gmra.mrb[0].mxu1 %v1559_v47 }
 0x1ce   : > { %1395 = vmatprep.mubr.bf16.mxu1 %v1560_v48 }
 0x1d5   : > { %1396 = vmatmul.mubr.bf16.gmra.mrb[4].mxu1 %v1561_v49  ;;  %v1804_v49 = vmov 0.0  }
 0x1d6   : > { %1399 = vmatprep.mubr.bf16.mxu1 %v1562_v50  ;;  %1439 = vmatprep.subr.bf16.mxu1 %v1804_v49  ;;  %v1267_v50 = vld [vmem:[%s2217_s6] ss:$0 sm:$0xff] }
 0x1dd   : > { %1400 = vmatmul.mubr.bf16.gmra.mrb[8].mxu1 %v1563_v51 }
 0x1de   : > { %1403 = vmatprep.mubr.bf16.mxu1 %v1564_v52 }
 0x1e5   : > { %1404 = vmatmul.mubr.bf16.gmra.mrb[12].mxu1 %v1565_v53 }
 0x1e6   : > { %1455 = vmatprep.mubr.msk.bf16.mxu1 %vm1805_vm0, %v1804_v49 }
 0x2a0   : > { %v1393_v57 = vpop.f32.mrb[0].mxu1 }
 0x2a1   : > { %v751_v58 = vadd.f32 %v1393_v57, %v1258_v56  ;;  %v742_v59 = vpop.f32.mrb[1].mxu1 }
 0x2a2   : > { %v743_v60 = vadd.f32 %v1258_v56, %v742_v59  ;;  %v1394_v61 = vpop.f32.mrb[2].mxu1 }
 0x2a3   : > { %v754_v62 = vadd.f32 %v1394_v61, %v1258_v56  ;;  %v745_v63 = vpop.f32.mrb[3].mxu1  ;;  %v807_v1 = vmax.f32 %v751_v58, 0.0 }
 0x2a4   : > { %v746_v0 = vadd.f32 %v1258_v56, %v745_v63  ;;  %v805_v3 = vmax.f32 %v743_v60, 0.0 }
 0x2a5   : > { %v808_v2 = vmax.f32 %v754_v62, 0.0 }
 0x2a6   : > { %v806_v4 = vmax.f32 %v746_v0, 0.0 }
 0x2a7   : > { %v822_v5 = vpack.c.bf16 %v808_v2, %v807_v1 }
 0x2a8   : > { %v821_v6 = vpack.c.bf16 %v806_v4, %v805_v3  ;;  %v1397_v7 = vpop.f32.mrb[4].mxu1 }
 0x2a9   : > { %v767_v8 = vadd.f32 %v1397_v7, %v1258_v56  ;;  %v758_v9 = vpop.f32.mrb[5].mxu1 }
 0x2aa   : > { %v759_v10 = vadd.f32 %v1258_v56, %v758_v9  ;;  %v1398_v11 = vpop.f32.mrb[6].mxu1  ;;  %1423 = vmatprep.mubr.bf16.mxu0 %v821_v6 }
 0x2ab   : > { %v770_v12 = vadd.f32 %v1398_v11, %v1258_v56  ;;  %v761_v13 = vpop.f32.mrb[7].mxu1  ;;  %1424 = vmatmul.mubr.bf16.vlgmr.msra.gmra.mrb[16].mxu0 %v822_v5  ;;  %v811_v15 = vmax.f32 %v767_v8, 0.0 }
 0x2ac   : > { %v762_v14 = vadd.f32 %v1258_v56, %v761_v13  ;;  %v809_v17 = vmax.f32 %v759_v10, 0.0 }
 0x2ad   : > { %v812_v16 = vmax.f32 %v770_v12, 0.0 }
 0x2ae   : > { %v810_v18 = vmax.f32 %v762_v14, 0.0 }
 0x2af   : > { %v824_v19 = vpack.c.bf16 %v812_v16, %v811_v15 }
 0x2b0   : > { %v823_v20 = vpack.c.bf16 %v810_v18, %v809_v17  ;;  %v1401_v21 = vpop.f32.mrb[8].mxu1 }
 0x2b1   : > { %v783_v22 = vadd.f32 %v1401_v21, %v1258_v56  ;;  %v774_v23 = vpop.f32.mrb[9].mxu1 }
 0x2b2   : > { %v775_v24 = vadd.f32 %v1258_v56, %v774_v23  ;;  %v1402_v25 = vpop.f32.mrb[10].mxu1  ;;  %1427 = vmatprep.mubr.bf16.mxu0 %v823_v20 }
 0x2b3   : > { %v786_v26 = vadd.f32 %v1402_v25, %v1258_v56  ;;  %v777_v27 = vpop.f32.mrb[11].mxu1  ;;  %1428 = vmatmul.mubr.bf16.gmra.mrb[20].mxu0 %v824_v19  ;;  %v815_v29 = vmax.f32 %v783_v22, 0.0 }
 0x2b4   : > { %v778_v28 = vadd.f32 %v1258_v56, %v777_v27  ;;  %v813_v31 = vmax.f32 %v775_v24, 0.0 }
 0x2b5   : > { %v816_v30 = vmax.f32 %v786_v26, 0.0 }
 0x2b6   : > { %v814_v32 = vmax.f32 %v778_v28, 0.0 }
 0x2b7   : > { %v826_v33 = vpack.c.bf16 %v816_v30, %v815_v29 }
 0x2b8   : > { %v825_v34 = vpack.c.bf16 %v814_v32, %v813_v31  ;;  %v1405_v35 = vpop.f32.mrb[12].mxu1 }
 0x2b9   : > { %v799_v36 = vadd.f32 %v1405_v35, %v1258_v56  ;;  %v790_v37 = vpop.f32.mrb[13].mxu1 }
 0x2ba   : > { %v791_v38 = vadd.f32 %v1258_v56, %v790_v37  ;;  %v1406_v39 = vpop.f32.mrb[14].mxu1  ;;  %1431 = vmatprep.mubr.bf16.mxu0 %v825_v34 }
 0x2bb   : > { %v802_v40 = vadd.f32 %v1406_v39, %v1258_v56  ;;  %v793_v41 = vpop.f32.mrb[15].mxu1  ;;  %1432 = vmatmul.mubr.bf16.gmra.mrb[24].mxu0 %v826_v33  ;;  %v819_v43 = vmax.f32 %v799_v36, 0.0 }
 0x2bc   : > { %v794_v42 = vadd.f32 %v1258_v56, %v793_v41  ;;  %v817_v45 = vmax.f32 %v791_v38, 0.0 }
 0x2bd   : > { %v820_v44 = vmax.f32 %v802_v40, 0.0 }
 0x2be   : > { %v818_v46 = vmax.f32 %v794_v42, 0.0 }
 0x2bf   : > { %v828_v47 = vpack.c.bf16 %v820_v44, %v819_v43  ;;  %v1574_v43 = vld [vmem:[%s2123_s29] sm:$0xff]  }
 0x2c0   : > { %v827_v48 = vpack.c.bf16 %v818_v46, %v817_v45 }
 0x2c2   : > { %1435 = vmatprep.mubr.bf16.mxu0 %v827_v48 }
 0x2c3   : > { %1436 = vmatmul.mubr.bf16.gmra.mrb[28].mxu0 %v828_v47 }
 0x37e   : > { %v1425_v51 = vpop.f32.mrb[16].mxu0 }
 0x37f   : > { %v943_v52 = vadd.f32 %v1425_v51, %v1267_v50  ;;  %v934_v53 = vpop.f32.mrb[17].mxu0 }
 0x380   : > { %v935_v54 = vadd.f32 %v1267_v50, %v934_v53  ;;  %v1426_v55 = vpop.f32.mrb[18].mxu0 }
 0x381   : > { %v946_v56 = vadd.f32 %v1426_v55, %v1267_v50  ;;  %v937_v57 = vpop.f32.mrb[19].mxu0  ;;  %v999_v59 = vmax.f32 %v943_v52, 0.0 }
 0x382   : > { %v938_v58 = vadd.f32 %v1267_v50, %v937_v57  ;;  %v997_v61 = vmax.f32 %v935_v54, 0.0 }
 0x383   : > { %v1000_v60 = vmax.f32 %v946_v56, 0.0 }
 0x384   : > { %v998_v62 = vmax.f32 %v938_v58, 0.0 }
 0x385   : > { %v1016_v63 = vpack.c.bf16 %v1000_v60, %v999_v59 }
 0x386   : > { %v1015_v0 = vpack.c.bf16 %v998_v62, %v997_v61  ;;  %v1429_v1 = vpop.f32.mrb[20].mxu0 }
 0x387   : > { %v959_v2 = vadd.f32 %v1429_v1, %v1267_v50  ;;  %v950_v3 = vpop.f32.mrb[21].mxu0 }
 0x388   : > { %v951_v4 = vadd.f32 %v1267_v50, %v950_v3  ;;  %v1430_v5 = vpop.f32.mrb[22].mxu0  ;;  %1440 = vmatpush3.bf16.msra.mxu1 %v1015_v0 }
 0x389   : > { %v962_v6 = vadd.f32 %v1430_v5, %v1267_v50  ;;  %v953_v7 = vpop.f32.mrb[23].mxu0  ;;  %1441 = vmatprep.subr.bf16.mxu1 %v1804_v49  ;;  %v1003_v9 = vmax.f32 %v959_v2, 0.0 }
 0x38a   : > { %v954_v8 = vadd.f32 %v1267_v50, %v953_v7  ;;  %v1001_v11 = vmax.f32 %v951_v4, 0.0 }
 0x38b   : > { %v1004_v10 = vmax.f32 %v962_v6, 0.0 }
 0x38c   : > { %v1002_v12 = vmax.f32 %v954_v8, 0.0  ;;  %1442 = vmatpush3.bf16.msra.mxu1 %v1016_v63 }
 0x38d   : > { %v1018_v13 = vpack.c.bf16 %v1004_v10, %v1003_v9  ;;  %1443 = vmatprep.subr.bf16.mxu1 %v1804_v49 }
 0x38e   : > { %v1017_v14 = vpack.c.bf16 %v1002_v12, %v1001_v11  ;;  %v1433_v15 = vpop.f32.mrb[24].mxu0 }
 0x38f   : > { %v975_v16 = vadd.f32 %v1433_v15, %v1267_v50  ;;  %v966_v17 = vpop.f32.mrb[25].mxu0 }
 0x390   : > { %v967_v18 = vadd.f32 %v1267_v50, %v966_v17  ;;  %v1434_v19 = vpop.f32.mrb[26].mxu0  ;;  %1444 = vmatpush3.bf16.msra.mxu1 %v1017_v14 }
 0x391   : > { %v978_v20 = vadd.f32 %v1434_v19, %v1267_v50  ;;  %v969_v21 = vpop.f32.mrb[27].mxu0  ;;  %1445 = vmatprep.subr.bf16.mxu1 %v1804_v49  ;;  %v1007_v23 = vmax.f32 %v975_v16, 0.0 }
 0x392   : > { %v970_v22 = vadd.f32 %v1267_v50, %v969_v21  ;;  %v1005_v25 = vmax.f32 %v967_v18, 0.0 }
 0x393   : > { %v1008_v24 = vmax.f32 %v978_v20, 0.0 }
 0x394   : > { %v1006_v26 = vmax.f32 %v970_v22, 0.0  ;;  %1446 = vmatpush3.bf16.msra.mxu1 %v1018_v13 }
 0x395   : > { %v1020_v27 = vpack.c.bf16 %v1008_v24, %v1007_v23  ;;  %1447 = vmatprep.subr.bf16.mxu1 %v1804_v49 }
 0x396   : > { %v1019_v28 = vpack.c.bf16 %v1006_v26, %v1005_v25  ;;  %v1437_v29 = vpop.f32.mrb[28].mxu0 }
 0x397   : > { %v991_v30 = vadd.f32 %v1437_v29, %v1267_v50  ;;  %v982_v31 = vpop.f32.mrb[29].mxu0 }
 0x398   : > { %v983_v32 = vadd.f32 %v1267_v50, %v982_v31  ;;  %v1438_v33 = vpop.f32.mrb[30].mxu0  ;;  %1448 = vmatpush3.bf16.msra.mxu1 %v1019_v28 }
 0x399   : > { %v994_v34 = vadd.f32 %v1438_v33, %v1267_v50  ;;  %v985_v35 = vpop.f32.mrb[31].mxu0  ;;  %1449 = vmatprep.subr.bf16.mxu1 %v1804_v49  ;;  %v1011_v37 = vmax.f32 %v991_v30, 0.0 }
 0x39a   : > { %v986_v36 = vadd.f32 %v1267_v50, %v985_v35  ;;  %v1009_v39 = vmax.f32 %v983_v32, 0.0 }
 0x39b   : > { %v1012_v38 = vmax.f32 %v994_v34, 0.0 }
 0x39c   : > { %v1010_v40 = vmax.f32 %v986_v36, 0.0  ;;  %1450 = vmatpush3.bf16.msra.mxu1 %v1020_v27 }
 0x39d   : > { %v1022_v41 = vpack.c.bf16 %v1012_v38, %v1011_v37  ;;  %1451 = vmatprep.subr.bf16.mxu1 %v1804_v49 }
 0x39e   : > { %v1021_v42 = vpack.c.bf16 %v1010_v40, %v1009_v39 }
 0x3a0   : > { %1452 = vmatpush3.bf16.msra.mxu1 %v1021_v42 }
 0x3a1   : > { %1453 = vmatprep.subr.bf16.mxu1 %v1804_v49 }
 0x3a4   : > { %1454 = vmatpush3.bf16.msra.mxu1 %v1022_v41 }
 0x3a7   : > { %1456 = vmatmul.mubr.bf16.vlgmr.msra.gmra.mrb[16].mxu1 %v1574_v43 }
 0x47a   : > { %v1063_v44 = vpop.f32.mrb[16].mxu1 }
 0x47b   : > { %1070 = vst [vmem:[%s402_s3] sm:$0xff] %v1063_v44  ;;  %v1457_v45 = vpop.f32.mrb[17].mxu1 }
 0x47c   : > { %v1066_v46 = vpop.f32.mrb[18].mxu1 }
 0x47d   : > { %1071 = vst [vmem:[%s402_s3 + $0x8] sm:$0xff] %v1066_v46  ;;  %v1458_v47 = vpop.f32.mrb[19].mxu1 }
 0x47e   : > { %1734 = shalt.err (!%p1731_p1)
}
 0x47f   : > { %s1735_s15 = scalar_lea.hbm %s2168_s11, 256  ;;  %s1739_s29 = scalar_lea.hbm %s2218_s7, 1024 }
 0x480   : > { %p1736_p5 = scmp.ne.s32.totalorder %s2168_s11, %s1735_s15  ;;  %p1740_p4 = scmp.lt.u32.totalorder %s2168_s11, %s2218_s7 }
 0x481   : > { %p1741_p7 = scmp.lt.u32.totalorder %s1739_s29, %s1735_s15  ;;  %p1743_p3 = scmp.lt.u32.totalorder %s1735_s15, %s2168_s11 }
 0x482   : > { %p1737_p11 = pnand %p1736_p5, %p2268_p8 }
 0x483   : > { %p1742_p13 = por %p1741_p7, %p1740_p4 }
 0x484   : > { %p1738_p12 = pneg %p1737_p11 }
 0x485   : > { %p1744_p0 = por %p1743_p3, %p1742_p13 }
 0x487   : > { %p1745_p6 = pnand %p1744_p0, %p1738_p12 }
 0x489   : > { %1748 = shalt.err (!%p1745_p6)
}
 0x48a   : > { %s1807_s18 = smov 128   ;;  %s1808_s16 = smov 8  }
 0x48b   : > { %1473 = dma.vmem_to_hbm [thread:$0]  (%p2268_p8), %s2163_s1, 256, %s2168_s11, %s1073_s9, %s1807_s18, %s1807_s18, %s1808_s16  }
 0x48c PF: > { %s2269_s26 = sld [smem:[#allocation19_spill]]  ;;  %p1501_p2 = scmp.ge.s32.totalorder %s1795_s27, 2 }
 0x48d   : > { %s1101_s3 = sand.u32 1, %s1783_s24  }
 0x48e   : > { %s1102_s19 = scalar_lea.sflag [#allocation4], %s1101_s3 }
 0x492   : > { %p2270_p9 = scmp.ne.s32.totalorder %s2269_s26, 0 }
 0x494   : > { %p1493_p10 = pnand %p1501_p2, %p2270_p9 }
 0x496   : > { %1778 = dma.done.wait (!%p1493_p10), %s1102_s19, 256  }
 0x497   : > { %1780 = vsyncadd (!%p1493_p10), %s1102_s19, 4294967040  ;;  %s2271_s27 = sld [smem:[#allocation17_spill]]  ;;  %s2272_s20 = sld [smem:[#allocation16_spill]] }
 0x498   : > { %s2273_s26 = sld [smem:[#allocation18_spill]]  ;;  %s2274_s24 = smov %s1787_s25 }
 0x49d   : > { %p24_p1 = scmp.ge.s32.totalorder %s2271_s27, 6   ;;  %s2275_s25 = smov %s2272_s20 }
 0x49f   :  { %26 = sbr.rel (!%p24_p1) target bundleno = 11 (0xb), region = 125 }
 0x4a6   :  { %1107 = vsyncpa [#allocation3], 1 }
 0x4a7   :  { %1109 = vsyncpa [#allocation3 + $0x1], 1 }
 0x4a8   :  { %1110 = vsyncpa [#allocation6], 1 }
 0x4a9   :  { %1112 = vsyncpa [#allocation6 + $0x1], 1 }
 0x4aa   :  { %1113 = vsyncpa [#allocation9], 1 }
 0x4ab   :  { %1114 = vsyncpa [#allocation4], 1 }
 0x4ac   :  { %1116 = vsyncpa [#allocation4 + $0x1], 1 }

</bundles_post_ra>
